<compile_context>
chip_gen: v7x
topology: tpu7x:2x2x1
jax: 0.10.0
libtpu: 0.0.40
codegen_flags: <defaults>
</compile_context>

<pallas_src>
import functools
import math

import jax
import jax.numpy as jnp
from jax.experimental import pallas as pl
from jax.experimental.pallas import tpu as pltpu

# ---- scaled-down configuration consistent with the module structure ----
N_FINE = 8
N_VARS = 1
INPUT_DIM = N_FINE * N_FINE * N_VARS + 1      # 65   (original: 50*50+1 = 2501)
HIDDEN_DIM = 64                               # original: 2048
NUM_LAYERS = 2                                # MLP depth knob, as in ODEFunc
D_MODEL = 32                                  # original: 512
NHEAD = 4                                     # irrelevant at seq_len==1 (heads re-concatenate)
DIM_FF = 64                                   # TransformerEncoderLayer default is 2048
TRANSFORMER_LAYERS = 2
MAX_LEN = 100
LN_EPS = 1e-5

PAD = 128                                     # lane width of every packed weight / bias row
PAD_ROWS = 8                                  # sublane rows of the activation slab


def _round_up(x, m):
    return ((x + m - 1) // m) * m


# ============================ fused Pallas kernel ============================

def _softplus(x):
    # numerically-stable softplus, matches torch.nn.Softplus (beta=1)
    return jnp.maximum(x, 0.0) + jnp.log1p(jnp.exp(-jnp.abs(x)))


def _layernorm(x, gamma, beta, eps=LN_EPS):
    # two-pass variance on an exact-width tile (no reliance on zero padding)
    mu = jnp.mean(x, axis=-1, keepdims=True)
    xc = x - mu
    var = jnp.mean(xc * xc, axis=-1, keepdims=True)
    return xc * jax.lax.rsqrt(var + eps) * gamma + beta


def _fused_kernel(t_ref, y_ref, w_ref, b_ref, o_ref, *, layout):
    f32, bf16 = jnp.float32, jnp.bfloat16

    def wmm(a, off):
        # weight block loaded lazily at its point of use from the packed bf16 slab
        k = a.shape[-1]
        return jnp.dot(a.astype(bf16), w_ref[off:off + k, :],
                       preferred_element_type=f32)

    def brow(r, n=PAD):
        return b_ref[r:r + 1, :][:, :n]        # (1, n) f32 bias / gamma / beta / PE row

    t = t_ref[0, 0]                                               # SMEM scalar
    y8 = jnp.broadcast_to(y_ref[...], (PAD_ROWS, INPUT_DIM - 1))  # 8 identical rows

    # --- fused input matmul: [t | y] @ [net0_w | emb_w]; t-column folded into a VPU axpy ---
    c0 = wmm(y8, layout["w_y"])
    c0 = c0 + t * brow(layout["r_wt"]) + brow(layout["r_bA"])     # b_A already holds emb_b + PE
    h = jnp.tanh(c0[:, :HIDDEN_DIM])                              # (8, 64)  MLP branch hidden
    z = c0[:, HIDDEN_DIM:HIDDEN_DIM + D_MODEL]                    # (8, 32)  transformer token

    # --- MLP middle layers: Linear + Softplus ---
    for w_off, r_b in layout["mlp_mid"]:
        h = _softplus(wmm(h, w_off)[:, :HIDDEN_DIM] + brow(r_b, HIDDEN_DIM))

    # --- transformer encoder layers (post-norm, ReLU FFN).  seq_len == 1 ⇒ softmax over one
    #     key is identity ⇒ attention == a single affine map, folded at init (w_attn/b_attn).
    for lp in layout["layers"]:
        attn = wmm(z, lp["w_attn"])[:, :D_MODEL] + brow(lp["r_battn"], D_MODEL)
        z = _layernorm(z + attn, brow(lp["r_g1"], D_MODEL), brow(lp["r_b1"], D_MODEL))
        ff = jnp.maximum(wmm(z, lp["w_ff1"])[:, :DIM_FF] + brow(lp["r_bff1"], DIM_FF), 0.0)
        ff = wmm(ff, lp["w_ff2"])[:, :D_MODEL] + brow(lp["r_bff2"], D_MODEL)
        z = _layernorm(z + ff, brow(lp["r_g2"], D_MODEL), brow(lp["r_b2"], D_MODEL))

    # --- merged final matmul: [h | z] @ [net[-1]_w ; dec_w] produces y1 + y2 directly ---
    hz = jnp.concatenate([h, z], axis=-1)                         # (8, 96)
    o_ref[...] = wmm(hz, layout["w_fin"]) + brow(layout["r_bfin"])


# ============================ parameter init / folding / packing ============================

def make_positional_encoding(d_model, max_len=MAX_LEN):
    position = jnp.arange(max_len, dtype=jnp.float32)[:, None]
    div_term = jnp.exp(
        jnp.arange(0, d_model, 2, dtype=jnp.float32) * (-math.log(10000.0) / d_model))
    angles = position * div_term
    pe = jnp.zeros((max_len, d_model), jnp.float32)
    pe = pe.at[:, 0::2].set(jnp.sin(angles))
    pe = pe.at[:, 1::2].set(jnp.cos(angles))
    return pe[:, None, :]                     # (max_len, 1, d_model) — as in the buffer


def init_params(key):
    """True-shaped parameters (weights pre-transposed to (in_features, out_features))."""
    keys = iter(jax.random.split(key, 64))

    def lin(fan_in, fan_out):
        kw, kb = jax.random.split(next(keys))
        w = jax.random.normal(kw, (fan_in, fan_out), jnp.float32) / math.sqrt(fan_in)
        b = jax.random.normal(kb, (fan_out,), jnp.float32) * 0.01
        return w, b

    p = {}
    # MLP: Linear(in,hid)+Tanh, (num_layers-1)x[Linear(hid,hid)+Softplus], Linear(hid,in)
    net = [lin(INPUT_DIM, HIDDEN_DIM)]
    for _ in range(NUM_LAYERS - 1):
        net.append(lin(HIDDEN_DIM, HIDDEN_DIM))
    net.append(lin(HIDDEN_DIM, INPUT_DIM))
    p["net"] = net

    p["emb_w"], p["emb_b"] = lin(INPUT_DIM, D_MODEL)
    p["pe0"] = make_positional_encoding(D_MODEL)[0, 0, :]        # PE added to the single token

    layers = []
    for _ in range(TRANSFORMER_LAYERS):
        in_w, in_b = lin(D_MODEL, 3 * D_MODEL)                   # packed QKV in-projection
        # seq_len == 1: only the V slice of the packed in-projection reaches the output
        v_w, v_b = in_w[:, 2 * D_MODEL:], in_b[2 * D_MODEL:]
        out_w, out_b = lin(D_MODEL, D_MODEL)
        ff1_w, ff1_b = lin(D_MODEL, DIM_FF)
        ff2_w, ff2_b = lin(DIM_FF, D_MODEL)
        layers.append(dict(
            v_w=v_w, v_b=v_b, out_w=out_w, out_b=out_b,
            ff1_w=ff1_w, ff1_b=ff1_b, ff2_w=ff2_w, ff2_b=ff2_b,
            ln1_g=jnp.ones((D_MODEL,), jnp.float32), ln1_b=jnp.zeros((D_MODEL,), jnp.float32),
            ln2_g=jnp.ones((D_MODEL,), jnp.float32), ln2_b=jnp.zeros((D_MODEL,), jnp.float32)))
    p["layers"] = layers

    p["dec_w"], p["dec_b"] = lin(D_MODEL, INPUT_DIM)
    return p


def pack_params(p):
    """Fold (attention, emb_b+PE, output add) and pack everything into two contiguous slabs."""
    wblocks, brows, layout = [], [], {}

    def add_w(w):                                        # -> row offset in the weight slab
        k, n = w.shape
        kp = _round_up(k, 16)                            # bf16 (16,128) sublane-tile alignment
        assert n <= PAD
        blk = jnp.zeros((kp, PAD), jnp.float32).at[:k, :n].set(w)
        off = sum(b.shape[0] for b in wblocks)
        wblocks.append(blk)
        return off

    def add_b(v):                                        # -> row index in the bias slab
        r = len(brows)
        brows.append(jnp.zeros((PAD,), jnp.float32).at[:v.shape[0]].set(v))
        return r

    net = p["net"]

    # fused input layer: x = [t | y]; weight split into the t-row (VPU axpy) and the y-rows
    # (MXU matmul); MLP layer-0 and embedding packed side-by-side along N; emb_b + PE folded.
    w_y = jnp.concatenate([net[0][0][1:, :], p["emb_w"][1:, :]], axis=1)        # (64, 96)
    layout["w_y"] = add_w(w_y)
    layout["r_wt"] = add_b(jnp.concatenate([net[0][0][0, :], p["emb_w"][0, :]]))
    layout["r_bA"] = add_b(jnp.concatenate([net[0][1], p["emb_b"] + p["pe0"]]))

    layout["mlp_mid"] = [(add_w(w), add_b(b)) for (w, b) in net[1:-1]]

    layers = []
    for lp in p["layers"]:
        w_attn = lp["v_w"] @ lp["out_w"]                                        # (32, 32)
        b_attn = lp["v_b"] @ lp["out_w"] + lp["out_b"]
        layers.append(dict(
            w_attn=add_w(w_attn), r_battn=add_b(b_attn),
            r_g1=add_b(lp["ln1_g"]), r_b1=add_b(lp["ln1_b"]),
            w_ff1=add_w(lp["ff1_w"]), r_bff1=add_b(lp["ff1_b"]),
            w_ff2=add_w(lp["ff2_w"]), r_bff2=add_b(lp["ff2_b"]),
            r_g2=add_b(lp["ln2_g"]), r_b2=add_b(lp["ln2_b"])))
    layout["layers"] = layers

    # merged output layer: [h | z] @ [net[-1]_w ; dec_w], biases pre-summed -> y1 + y2
    layout["w_fin"] = add_w(jnp.concatenate([net[-1][0], p["dec_w"]], axis=0))  # (96, 65)
    layout["r_bfin"] = add_b(net[-1][1] + p["dec_b"])

    w_slab = jnp.concatenate(wblocks, axis=0).astype(jnp.bfloat16)              # (480, 128) bf16
    nb = _round_up(len(brows), 8)
    b_slab = jnp.stack(brows + [jnp.zeros((PAD,), jnp.float32)] * (nb - len(brows)))  # (24, 128)
    return w_slab, b_slab, layout


# ============================ forward wrapper ============================

def build_ode_func_forward(params):
    w_slab, b_slab, layout = pack_params(params)

    fused = pl.pallas_call(
        functools.partial(_fused_kernel, layout=layout),
        out_shape=jax.ShapeDtypeStruct((PAD_ROWS, PAD), jnp.float32),
        in_specs=[
            pl.BlockSpec(memory_space=pltpu.MemorySpace.SMEM),   # t       (1, 1)    f32 scalar
            pl.BlockSpec(memory_space=pltpu.MemorySpace.VMEM),   # y       (1, 64)   f32
            pl.BlockSpec(memory_space=pltpu.MemorySpace.VMEM),   # weights (480, 128) bf16
            pl.BlockSpec(memory_space=pltpu.MemorySpace.VMEM),   # biases  (24, 128)  f32
        ],
        out_specs=pl.BlockSpec(memory_space=pltpu.MemorySpace.VMEM),
    )

    def forward(t, y):
        """Mirror of ODEFunc.forward(t, y).  y: (1, INPUT_DIM-1)."""
        assert y.shape[0] == 1, "ODEFunc.forward (as written in PyTorch) only type-checks for batch=1"
        t_arr = jnp.full((1, 1), t, jnp.float32)
        out = fused(t_arr, y.astype(jnp.float32), w_slab, b_slab)   # one fused kernel launch
        return out[:1, :INPUT_DIM - 1]                              # y1 + y2, (1, 64)

    return jax.jit(forward)


if __name__ == "__main__":
    key = jax.random.PRNGKey(0)
    pk, yk = jax.random.split(key)
    params = init_params(pk)
    ode_func_forward = build_ode_func_forward(params)

    y = jax.random.normal(yk, (1, INPUT_DIM - 1), jnp.float32)      # (1, 64)
    t = jnp.float32(0.5)

    out = jax.block_until_ready(ode_func_forward(t, y))
    assert out.shape == (1, INPUT_DIM - 1)
    assert bool(jnp.all(jnp.isfinite(out)))
    print("KERNEL_OK")
</pallas_src>

<mosaic_0001>
module attributes {stable_mosaic.version = 11 : i64} {
  func.func @_fused_kernel(%arg0: memref<1x1xf32, #tpu.memory_space<smem>>, %arg1: memref<1x64xf32, #tpu.memory_space<vmem>>, %arg2: memref<480x128xbf16, #tpu.memory_space<vmem>>, %arg3: memref<24x128xf32, #tpu.memory_space<vmem>>, %arg4: memref<8x128xf32, #tpu.memory_space<vmem>>) attributes {dimension_semantics = [], scalar_prefetch = 0 : i64, scratch_operands = 0 : i64, tpu.core_type = #tpu.core_type<tc>} {
    %c0 = arith.constant 0 : index
    %c0_0 = arith.constant 0 : index
    %0 = memref.load %arg0[%c0, %c0_0] : memref<1x1xf32, #tpu.memory_space<smem>>
    %c0_1 = arith.constant 0 : index
    %c0_2 = arith.constant 0 : index
    %1 = vector.load %arg1[%c0_1, %c0_2] : memref<1x64xf32, #tpu.memory_space<vmem>>, vector<1x64xf32>
    %2 = vector.shape_cast %1 : vector<1x64xf32> to vector<1x64xf32>
    %3 = vector.broadcast %2 : vector<1x64xf32> to vector<8x64xf32>
    %4 = arith.truncf %3 : vector<8x64xf32> to vector<8x64xbf16>
    %c0_3 = arith.constant 0 : index
    %c0_4 = arith.constant 0 : index
    %5 = vector.load %arg2[%c0_3, %c0_4] : memref<480x128xbf16, #tpu.memory_space<vmem>>, vector<64x128xbf16>
    %cst = arith.constant dense<0.000000e+00> : vector<8x128xf32>
    %6 = tpu.matmul %4, %5, %cst {dimension_numbers = #tpu.dot_dimension_numbers<[1], [0], [0], [1], [0, 0, 1, 1], [], []>} : vector<8x64xbf16>, vector<64x128xbf16>, vector<8x128xf32> -> vector<8x128xf32>
    %c0_5 = arith.constant 0 : index
    %c0_6 = arith.constant 0 : index
    %7 = vector.load %arg3[%c0_5, %c0_6] : memref<24x128xf32, #tpu.memory_space<vmem>>, vector<1x128xf32>
    %8 = vector.broadcast %0 : f32 to vector<1x128xf32>
    %9 = arith.mulf %8, %7 : vector<1x128xf32>
    %10 = vector.broadcast %9 : vector<1x128xf32> to vector<8x128xf32>
    %11 = arith.addf %6, %10 : vector<8x128xf32>
    %c1 = arith.constant 1 : index
    %c0_7 = arith.constant 0 : index
    %12 = vector.load %arg3[%c1, %c0_7] : memref<24x128xf32, #tpu.memory_space<vmem>>, vector<1x128xf32>
    %13 = vector.broadcast %12 : vector<1x128xf32> to vector<8x128xf32>
    %14 = arith.addf %11, %13 : vector<8x128xf32>
    %15 = vector.extract_strided_slice %14 {offsets = [0, 0], sizes = [8, 64], strides = [1, 1]} : vector<8x128xf32> to vector<8x64xf32>
    %16 = math.tanh %15 : vector<8x64xf32>
    %17 = vector.extract_strided_slice %14 {offsets = [0, 64], sizes = [8, 32], strides = [1, 1]} : vector<8x128xf32> to vector<8x32xf32>
    %18 = arith.truncf %16 : vector<8x64xf32> to vector<8x64xbf16>
    %c64 = arith.constant 64 : index
    %c0_8 = arith.constant 0 : index
    %19 = vector.load %arg2[%c64, %c0_8] : memref<480x128xbf16, #tpu.memory_space<vmem>>, vector<64x128xbf16>
    %cst_9 = arith.constant dense<0.000000e+00> : vector<8x128xf32>
    %20 = tpu.matmul %18, %19, %cst_9 {dimension_numbers = #tpu.dot_dimension_numbers<[1], [0], [0], [1], [0, 0, 1, 1], [], []>} : vector<8x64xbf16>, vector<64x128xbf16>, vector<8x128xf32> -> vector<8x128xf32>
    %21 = vector.extract_strided_slice %20 {offsets = [0, 0], sizes = [8, 64], strides = [1, 1]} : vector<8x128xf32> to vector<8x64xf32>
    %c2 = arith.constant 2 : index
    %c0_10 = arith.constant 0 : index
    %22 = vector.load %arg3[%c2, %c0_10] : memref<24x128xf32, #tpu.memory_space<vmem>>, vector<1x128xf32>
    %23 = vector.extract_strided_slice %22 {offsets = [0, 0], sizes = [1, 64], strides = [1, 1]} : vector<1x128xf32> to vector<1x64xf32>
    %24 = vector.broadcast %23 : vector<1x64xf32> to vector<8x64xf32>
    %25 = arith.addf %21, %24 : vector<8x64xf32>
    %cst_11 = arith.constant 0.000000e+00 : f32
    %26 = vector.broadcast %cst_11 : f32 to vector<8x64xf32>
    %27 = arith.maximumf %25, %26 : vector<8x64xf32>
    %28 = math.absf %25 : vector<8x64xf32>
    %cst_12 = arith.constant 0.000000e+00 : f32
    %29 = vector.broadcast %cst_12 : f32 to vector<8x64xf32>
    %30 = arith.subf %29, %28 : vector<8x64xf32>
    %31 = math.exp %30 : vector<8x64xf32>
    %32 = math.log1p %31 : vector<8x64xf32>
    %33 = arith.addf %27, %32 : vector<8x64xf32>
    %34 = arith.truncf %17 : vector<8x32xf32> to vector<8x32xbf16>
    %c128 = arith.constant 128 : index
    %c0_13 = arith.constant 0 : index
    %35 = vector.load %arg2[%c128, %c0_13] : memref<480x128xbf16, #tpu.memory_space<vmem>>, vector<32x128xbf16>
    %cst_14 = arith.constant dense<0.000000e+00> : vector<8x128xf32>
    %36 = tpu.matmul %34, %35, %cst_14 {dimension_numbers = #tpu.dot_dimension_numbers<[1], [0], [0], [1], [0, 0, 1, 1], [], []>} : vector<8x32xbf16>, vector<32x128xbf16>, vector<8x128xf32> -> vector<8x128xf32>
    %37 = vector.extract_strided_slice %36 {offsets = [0, 0], sizes = [8, 32], strides = [1, 1]} : vector<8x128xf32> to vector<8x32xf32>
    %c3 = arith.constant 3 : index
    %c0_15 = arith.constant 0 : index
    %38 = vector.load %arg3[%c3, %c0_15] : memref<24x128xf32, #tpu.memory_space<vmem>>, vector<1x128xf32>
    %39 = vector.extract_strided_slice %38 {offsets = [0, 0], sizes = [1, 32], strides = [1, 1]} : vector<1x128xf32> to vector<1x32xf32>
    %40 = vector.broadcast %39 : vector<1x32xf32> to vector<8x32xf32>
    %41 = arith.addf %37, %40 : vector<8x32xf32>
    %42 = arith.addf %17, %41 : vector<8x32xf32>
    %c4 = arith.constant 4 : index
    %c0_16 = arith.constant 0 : index
    %43 = vector.load %arg3[%c4, %c0_16] : memref<24x128xf32, #tpu.memory_space<vmem>>, vector<1x128xf32>
    %44 = vector.extract_strided_slice %43 {offsets = [0, 0], sizes = [1, 32], strides = [1, 1]} : vector<1x128xf32> to vector<1x32xf32>
    %c5 = arith.constant 5 : index
    %c0_17 = arith.constant 0 : index
    %45 = vector.load %arg3[%c5, %c0_17] : memref<24x128xf32, #tpu.memory_space<vmem>>, vector<1x128xf32>
    %46 = vector.extract_strided_slice %45 {offsets = [0, 0], sizes = [1, 32], strides = [1, 1]} : vector<1x128xf32> to vector<1x32xf32>
    %cst_18 = arith.constant dense<0.000000e+00> : vector<8xf32>
    %47 = vector.multi_reduction <add>, %42, %cst_18 [1] : vector<8x32xf32> to vector<8xf32>
    %48 = vector.shape_cast %47 : vector<8xf32> to vector<8x1xf32>
    %cst_19 = arith.constant 3.200000e+01 : f32
    %49 = vector.broadcast %cst_19 : f32 to vector<8x1xf32>
    %50 = arith.divf %48, %49 : vector<8x1xf32>
    %51 = vector.broadcast %50 : vector<8x1xf32> to vector<8x32xf32>
    %52 = arith.subf %42, %51 : vector<8x32xf32>
    %53 = arith.mulf %52, %52 : vector<8x32xf32>
    %cst_20 = arith.constant dense<0.000000e+00> : vector<8xf32>
    %54 = vector.multi_reduction <add>, %53, %cst_20 [1] : vector<8x32xf32> to vector<8xf32>
    %55 = vector.shape_cast %54 : vector<8xf32> to vector<8x1xf32>
    %cst_21 = arith.constant 3.200000e+01 : f32
    %56 = vector.broadcast %cst_21 : f32 to vector<8x1xf32>
    %57 = arith.divf %55, %56 : vector<8x1xf32>
    %cst_22 = arith.constant 9.99999974E-6 : f32
    %58 = vector.broadcast %cst_22 : f32 to vector<8x1xf32>
    %59 = arith.addf %57, %58 : vector<8x1xf32>
    %60 = math.rsqrt %59 : vector<8x1xf32>
    %61 = vector.broadcast %60 : vector<8x1xf32> to vector<8x32xf32>
    %62 = arith.mulf %52, %61 : vector<8x32xf32>
    %63 = vector.broadcast %44 : vector<1x32xf32> to vector<8x32xf32>
    %64 = arith.mulf %62, %63 : vector<8x32xf32>
    %65 = vector.broadcast %46 : vector<1x32xf32> to vector<8x32xf32>
    %66 = arith.addf %64, %65 : vector<8x32xf32>
    %67 = arith.truncf %66 : vector<8x32xf32> to vector<8x32xbf16>
    %c160 = arith.constant 160 : index
    %c0_23 = arith.constant 0 : index
    %68 = vector.load %arg2[%c160, %c0_23] : memref<480x128xbf16, #tpu.memory_space<vmem>>, vector<32x128xbf16>
    %cst_24 = arith.constant dense<0.000000e+00> : vector<8x128xf32>
    %69 = tpu.matmul %67, %68, %cst_24 {dimension_numbers = #tpu.dot_dimension_numbers<[1], [0], [0], [1], [0, 0, 1, 1], [], []>} : vector<8x32xbf16>, vector<32x128xbf16>, vector<8x128xf32> -> vector<8x128xf32>
    %70 = vector.extract_strided_slice %69 {offsets = [0, 0], sizes = [8, 64], strides = [1, 1]} : vector<8x128xf32> to vector<8x64xf32>
    %c6 = arith.constant 6 : index
    %c0_25 = arith.constant 0 : index
    %71 = vector.load %arg3[%c6, %c0_25] : memref<24x128xf32, #tpu.memory_space<vmem>>, vector<1x128xf32>
    %72 = vector.extract_strided_slice %71 {offsets = [0, 0], sizes = [1, 64], strides = [1, 1]} : vector<1x128xf32> to vector<1x64xf32>
    %73 = vector.broadcast %72 : vector<1x64xf32> to vector<8x64xf32>
    %74 = arith.addf %70, %73 : vector<8x64xf32>
    %cst_26 = arith.constant 0.000000e+00 : f32
    %75 = vector.broadcast %cst_26 : f32 to vector<8x64xf32>
    %76 = arith.maximumf %74, %75 : vector<8x64xf32>
    %77 = arith.truncf %76 : vector<8x64xf32> to vector<8x64xbf16>
    %c192 = arith.constant 192 : index
    %c0_27 = arith.constant 0 : index
    %78 = vector.load %arg2[%c192, %c0_27] : memref<480x128xbf16, #tpu.memory_space<vmem>>, vector<64x128xbf16>
    %cst_28 = arith.constant dense<0.000000e+00> : vector<8x128xf32>
    %79 = tpu.matmul %77, %78, %cst_28 {dimension_numbers = #tpu.dot_dimension_numbers<[1], [0], [0], [1], [0, 0, 1, 1], [], []>} : vector<8x64xbf16>, vector<64x128xbf16>, vector<8x128xf32> -> vector<8x128xf32>
    %80 = vector.extract_strided_slice %79 {offsets = [0, 0], sizes = [8, 32], strides = [1, 1]} : vector<8x128xf32> to vector<8x32xf32>
    %c7 = arith.constant 7 : index
    %c0_29 = arith.constant 0 : index
    %81 = vector.load %arg3[%c7, %c0_29] : memref<24x128xf32, #tpu.memory_space<vmem>>, vector<1x128xf32>
    %82 = vector.extract_strided_slice %81 {offsets = [0, 0], sizes = [1, 32], strides = [1, 1]} : vector<1x128xf32> to vector<1x32xf32>
    %83 = vector.broadcast %82 : vector<1x32xf32> to vector<8x32xf32>
    %84 = arith.addf %80, %83 : vector<8x32xf32>
    %85 = arith.addf %66, %84 : vector<8x32xf32>
    %c8 = arith.constant 8 : index
    %c0_30 = arith.constant 0 : index
    %86 = vector.load %arg3[%c8, %c0_30] : memref<24x128xf32, #tpu.memory_space<vmem>>, vector<1x128xf32>
    %87 = vector.extract_strided_slice %86 {offsets = [0, 0], sizes = [1, 32], strides = [1, 1]} : vector<1x128xf32> to vector<1x32xf32>
    %c9 = arith.constant 9 : index
    %c0_31 = arith.constant 0 : index
    %88 = vector.load %arg3[%c9, %c0_31] : memref<24x128xf32, #tpu.memory_space<vmem>>, vector<1x128xf32>
    %89 = vector.extract_strided_slice %88 {offsets = [0, 0], sizes = [1, 32], strides = [1, 1]} : vector<1x128xf32> to vector<1x32xf32>
    %cst_32 = arith.constant dense<0.000000e+00> : vector<8xf32>
    %90 = vector.multi_reduction <add>, %85, %cst_32 [1] : vector<8x32xf32> to vector<8xf32>
    %91 = vector.shape_cast %90 : vector<8xf32> to vector<8x1xf32>
    %cst_33 = arith.constant 3.200000e+01 : f32
    %92 = vector.broadcast %cst_33 : f32 to vector<8x1xf32>
    %93 = arith.divf %91, %92 : vector<8x1xf32>
    %94 = vector.broadcast %93 : vector<8x1xf32> to vector<8x32xf32>
    %95 = arith.subf %85, %94 : vector<8x32xf32>
    %96 = arith.mulf %95, %95 : vector<8x32xf32>
    %cst_34 = arith.constant dense<0.000000e+00> : vector<8xf32>
    %97 = vector.multi_reduction <add>, %96, %cst_34 [1] : vector<8x32xf32> to vector<8xf32>
    %98 = vector.shape_cast %97 : vector<8xf32> to vector<8x1xf32>
    %cst_35 = arith.constant 3.200000e+01 : f32
    %99 = vector.broadcast %cst_35 : f32 to vector<8x1xf32>
    %100 = arith.divf %98, %99 : vector<8x1xf32>
    %cst_36 = arith.constant 9.99999974E-6 : f32
    %101 = vector.broadcast %cst_36 : f32 to vector<8x1xf32>
    %102 = arith.addf %100, %101 : vector<8x1xf32>
    %103 = math.rsqrt %102 : vector<8x1xf32>
    %104 = vector.broadcast %103 : vector<8x1xf32> to vector<8x32xf32>
    %105 = arith.mulf %95, %104 : vector<8x32xf32>
    %106 = vector.broadcast %87 : vector<1x32xf32> to vector<8x32xf32>
    %107 = arith.mulf %105, %106 : vector<8x32xf32>
    %108 = vector.broadcast %89 : vector<1x32xf32> to vector<8x32xf32>
    %109 = arith.addf %107, %108 : vector<8x32xf32>
    %110 = arith.truncf %109 : vector<8x32xf32> to vector<8x32xbf16>
    %c256 = arith.constant 256 : index
    %c0_37 = arith.constant 0 : index
    %111 = vector.load %arg2[%c256, %c0_37] : memref<480x128xbf16, #tpu.memory_space<vmem>>, vector<32x128xbf16>
    %cst_38 = arith.constant dense<0.000000e+00> : vector<8x128xf32>
    %112 = tpu.matmul %110, %111, %cst_38 {dimension_numbers = #tpu.dot_dimension_numbers<[1], [0], [0], [1], [0, 0, 1, 1], [], []>} : vector<8x32xbf16>, vector<32x128xbf16>, vector<8x128xf32> -> vector<8x128xf32>
    %113 = vector.extract_strided_slice %112 {offsets = [0, 0], sizes = [8, 32], strides = [1, 1]} : vector<8x128xf32> to vector<8x32xf32>
    %c10 = arith.constant 10 : index
    %c0_39 = arith.constant 0 : index
    %114 = vector.load %arg3[%c10, %c0_39] : memref<24x128xf32, #tpu.memory_space<vmem>>, vector<1x128xf32>
    %115 = vector.extract_strided_slice %114 {offsets = [0, 0], sizes = [1, 32], strides = [1, 1]} : vector<1x128xf32> to vector<1x32xf32>
    %116 = vector.broadcast %115 : vector<1x32xf32> to vector<8x32xf32>
    %117 = arith.addf %113, %116 : vector<8x32xf32>
    %118 = arith.addf %109, %117 : vector<8x32xf32>
    %c11 = arith.constant 11 : index
    %c0_40 = arith.constant 0 : index
    %119 = vector.load %arg3[%c11, %c0_40] : memref<24x128xf32, #tpu.memory_space<vmem>>, vector<1x128xf32>
    %120 = vector.extract_strided_slice %119 {offsets = [0, 0], sizes = [1, 32], strides = [1, 1]} : vector<1x128xf32> to vector<1x32xf32>
    %c12 = arith.constant 12 : index
    %c0_41 = arith.constant 0 : index
    %121 = vector.load %arg3[%c12, %c0_41] : memref<24x128xf32, #tpu.memory_space<vmem>>, vector<1x128xf32>
    %122 = vector.extract_strided_slice %121 {offsets = [0, 0], sizes = [1, 32], strides = [1, 1]} : vector<1x128xf32> to vector<1x32xf32>
    %cst_42 = arith.constant dense<0.000000e+00> : vector<8xf32>
    %123 = vector.multi_reduction <add>, %118, %cst_42 [1] : vector<8x32xf32> to vector<8xf32>
    %124 = vector.shape_cast %123 : vector<8xf32> to vector<8x1xf32>
    %cst_43 = arith.constant 3.200000e+01 : f32
    %125 = vector.broadcast %cst_43 : f32 to vector<8x1xf32>
    %126 = arith.divf %124, %125 : vector<8x1xf32>
    %127 = vector.broadcast %126 : vector<8x1xf32> to vector<8x32xf32>
    %128 = arith.subf %118, %127 : vector<8x32xf32>
    %129 = arith.mulf %128, %128 : vector<8x32xf32>
    %cst_44 = arith.constant dense<0.000000e+00> : vector<8xf32>
    %130 = vector.multi_reduction <add>, %129, %cst_44 [1] : vector<8x32xf32> to vector<8xf32>
    %131 = vector.shape_cast %130 : vector<8xf32> to vector<8x1xf32>
    %cst_45 = arith.constant 3.200000e+01 : f32
    %132 = vector.broadcast %cst_45 : f32 to vector<8x1xf32>
    %133 = arith.divf %131, %132 : vector<8x1xf32>
    %cst_46 = arith.constant 9.99999974E-6 : f32
    %134 = vector.broadcast %cst_46 : f32 to vector<8x1xf32>
    %135 = arith.addf %133, %134 : vector<8x1xf32>
    %136 = math.rsqrt %135 : vector<8x1xf32>
    %137 = vector.broadcast %136 : vector<8x1xf32> to vector<8x32xf32>
    %138 = arith.mulf %128, %137 : vector<8x32xf32>
    %139 = vector.broadcast %120 : vector<1x32xf32> to vector<8x32xf32>
    %140 = arith.mulf %138, %139 : vector<8x32xf32>
    %141 = vector.broadcast %122 : vector<1x32xf32> to vector<8x32xf32>
    %142 = arith.addf %140, %141 : vector<8x32xf32>
    %143 = arith.truncf %142 : vector<8x32xf32> to vector<8x32xbf16>
    %c288 = arith.constant 288 : index
    %c0_47 = arith.constant 0 : index
    %144 = vector.load %arg2[%c288, %c0_47] : memref<480x128xbf16, #tpu.memory_space<vmem>>, vector<32x128xbf16>
    %cst_48 = arith.constant dense<0.000000e+00> : vector<8x128xf32>
    %145 = tpu.matmul %143, %144, %cst_48 {dimension_numbers = #tpu.dot_dimension_numbers<[1], [0], [0], [1], [0, 0, 1, 1], [], []>} : vector<8x32xbf16>, vector<32x128xbf16>, vector<8x128xf32> -> vector<8x128xf32>
    %146 = vector.extract_strided_slice %145 {offsets = [0, 0], sizes = [8, 64], strides = [1, 1]} : vector<8x128xf32> to vector<8x64xf32>
    %c13 = arith.constant 13 : index
    %c0_49 = arith.constant 0 : index
    %147 = vector.load %arg3[%c13, %c0_49] : memref<24x128xf32, #tpu.memory_space<vmem>>, vector<1x128xf32>
    %148 = vector.extract_strided_slice %147 {offsets = [0, 0], sizes = [1, 64], strides = [1, 1]} : vector<1x128xf32> to vector<1x64xf32>
    %149 = vector.broadcast %148 : vector<1x64xf32> to vector<8x64xf32>
    %150 = arith.addf %146, %149 : vector<8x64xf32>
    %cst_50 = arith.constant 0.000000e+00 : f32
    %151 = vector.broadcast %cst_50 : f32 to vector<8x64xf32>
    %152 = arith.maximumf %150, %151 : vector<8x64xf32>
    %153 = arith.truncf %152 : vector<8x64xf32> to vector<8x64xbf16>
    %c320 = arith.constant 320 : index
    %c0_51 = arith.constant 0 : index
    %154 = vector.load %arg2[%c320, %c0_51] : memref<480x128xbf16, #tpu.memory_space<vmem>>, vector<64x128xbf16>
    %cst_52 = arith.constant dense<0.000000e+00> : vector<8x128xf32>
    %155 = tpu.matmul %153, %154, %cst_52 {dimension_numbers = #tpu.dot_dimension_numbers<[1], [0], [0], [1], [0, 0, 1, 1], [], []>} : vector<8x64xbf16>, vector<64x128xbf16>, vector<8x128xf32> -> vector<8x128xf32>
    %156 = vector.extract_strided_slice %155 {offsets = [0, 0], sizes = [8, 32], strides = [1, 1]} : vector<8x128xf32> to vector<8x32xf32>
    %c14 = arith.constant 14 : index
    %c0_53 = arith.constant 0 : index
    %157 = vector.load %arg3[%c14, %c0_53] : memref<24x128xf32, #tpu.memory_space<vmem>>, vector<1x128xf32>
    %158 = vector.extract_strided_slice %157 {offsets = [0, 0], sizes = [1, 32], strides = [1, 1]} : vector<1x128xf32> to vector<1x32xf32>
    %159 = vector.broadcast %158 : vector<1x32xf32> to vector<8x32xf32>
    %160 = arith.addf %156, %159 : vector<8x32xf32>
    %161 = arith.addf %142, %160 : vector<8x32xf32>
    %c15 = arith.constant 15 : index
    %c0_54 = arith.constant 0 : index
    %162 = vector.load %arg3[%c15, %c0_54] : memref<24x128xf32, #tpu.memory_space<vmem>>, vector<1x128xf32>
    %163 = vector.extract_strided_slice %162 {offsets = [0, 0], sizes = [1, 32], strides = [1, 1]} : vector<1x128xf32> to vector<1x32xf32>
    %c16 = arith.constant 16 : index
    %c0_55 = arith.constant 0 : index
    %164 = vector.load %arg3[%c16, %c0_55] : memref<24x128xf32, #tpu.memory_space<vmem>>, vector<1x128xf32>
    %165 = vector.extract_strided_slice %164 {offsets = [0, 0], sizes = [1, 32], strides = [1, 1]} : vector<1x128xf32> to vector<1x32xf32>
    %cst_56 = arith.constant dense<0.000000e+00> : vector<8xf32>
    %166 = vector.multi_reduction <add>, %161, %cst_56 [1] : vector<8x32xf32> to vector<8xf32>
    %167 = vector.shape_cast %166 : vector<8xf32> to vector<8x1xf32>
    %cst_57 = arith.constant 3.200000e+01 : f32
    %168 = vector.broadcast %cst_57 : f32 to vector<8x1xf32>
    %169 = arith.divf %167, %168 : vector<8x1xf32>
    %170 = vector.broadcast %169 : vector<8x1xf32> to vector<8x32xf32>
    %171 = arith.subf %161, %170 : vector<8x32xf32>
    %172 = arith.mulf %171, %171 : vector<8x32xf32>
    %cst_58 = arith.constant dense<0.000000e+00> : vector<8xf32>
    %173 = vector.multi_reduction <add>, %172, %cst_58 [1] : vector<8x32xf32> to vector<8xf32>
    %174 = vector.shape_cast %173 : vector<8xf32> to vector<8x1xf32>
    %cst_59 = arith.constant 3.200000e+01 : f32
    %175 = vector.broadcast %cst_59 : f32 to vector<8x1xf32>
    %176 = arith.divf %174, %175 : vector<8x1xf32>
    %cst_60 = arith.constant 9.99999974E-6 : f32
    %177 = vector.broadcast %cst_60 : f32 to vector<8x1xf32>
    %178 = arith.addf %176, %177 : vector<8x1xf32>
    %179 = math.rsqrt %178 : vector<8x1xf32>
    %180 = vector.broadcast %179 : vector<8x1xf32> to vector<8x32xf32>
    %181 = arith.mulf %171, %180 : vector<8x32xf32>
    %182 = vector.broadcast %163 : vector<1x32xf32> to vector<8x32xf32>
    %183 = arith.mulf %181, %182 : vector<8x32xf32>
    %184 = vector.broadcast %165 : vector<1x32xf32> to vector<8x32xf32>
    %185 = arith.addf %183, %184 : vector<8x32xf32>
    %186 = tpu.concatenate %33, %185 in 1 : vector<8x64xf32>, vector<8x32xf32> -> vector<8x96xf32>
    %187 = arith.truncf %186 : vector<8x96xf32> to vector<8x96xbf16>
    %c384 = arith.constant 384 : index
    %c0_61 = arith.constant 0 : index
    %188 = vector.load %arg2[%c384, %c0_61] : memref<480x128xbf16, #tpu.memory_space<vmem>>, vector<96x128xbf16>
    %cst_62 = arith.constant dense<0.000000e+00> : vector<8x128xf32>
    %189 = tpu.matmul %187, %188, %cst_62 {dimension_numbers = #tpu.dot_dimension_numbers<[1], [0], [0], [1], [0, 0, 1, 1], [], []>} : vector<8x96xbf16>, vector<96x128xbf16>, vector<8x128xf32> -> vector<8x128xf32>
    %c17 = arith.constant 17 : index
    %c0_63 = arith.constant 0 : index
    %190 = vector.load %arg3[%c17, %c0_63] : memref<24x128xf32, #tpu.memory_space<vmem>>, vector<1x128xf32>
    %191 = vector.broadcast %190 : vector<1x128xf32> to vector<8x128xf32>
    %192 = arith.addf %189, %191 : vector<8x128xf32>
    %c0_64 = arith.constant 0 : index
    %c0_65 = arith.constant 0 : index
    %193 = vector.load %arg4[%c0_64, %c0_65] : memref<8x128xf32, #tpu.memory_space<vmem>>, vector<8x128xf32>
    tpu.vector_store %arg4[%c0_64, %c0_65], %192 {strides = array<i32>} : memref<8x128xf32, #tpu.memory_space<vmem>>, vector<8x128xf32>,
    return
  }
}

</mosaic_0001>

<bundles_post_ra>
// kernel: forward.1
= control target key start
LH: loop header
LB: loop body
LE: loop exit
PB: predicated region body
PF: predicated region fallthrough
CT: control target
= control target key end

     0   :  { %10 = vsyncpa [#allocation4], 0  ;;  %s1429_s0 = inlined_call_operand.<no memory space> [shape: f32[1,1], index: 0, kind: input, shape index: {}]   ;;  %s1430_s1 = inlined_call_operand.vmem [shape: f32[1,64], index: 1, kind: input, shape index: {}]   ;;  %s1431_s2 = inlined_call_operand.hbm [shape: bf16[480,128], index: 2, kind: input, shape index: {}]   ;;  %s1432_s3 = inlined_call_operand.hbm [shape: f32[24,128], index: 3, kind: input, shape index: {}]   ;;  %s1433_s4 = inlined_call_operand.vmem [shape: f32[8,128], index: 4, kind: output, shape index: {}]  }
   0x1   :  { %11 = vsyncpa [#allocation6], 0  ;;  %s1269_s15 = smov [#allocation3]   ;;  %s1221_s19 = scalar_lea.hbm %s1431_s2, 3840 }
   0x2   :  { %s21_s16 = sshll.u32 %s1269_s15, 4  ;;  %p1222_p0 = scmp.ne.s32.totalorder %s1431_s2, %s1221_s19  ;;  %s22_s16 = int_to_ptr.vmem [resolvable:$true] %s21_s16 }
   0x3   :  { %p1225_p1 = scmp.lt.u32.totalorder %s1221_s19, %s1431_s2 }
   0x5   :  { %p1227_p2 = pnand %p1225_p1, %p1222_p0 }
   0x7   :  { %1230 = shalt.err (!%p1227_p2)
}
   0x8   :  { %s1231_s24 = scalar_lea.vmem %s22_s16, 3840  ;;  %p1236_p4 = scmp.lt.s32.totalorder %s22_s16, %s22_s16 }
   0x9   :  { %p1232_p3 = scmp.ne.s32.totalorder %s22_s16, %s1231_s24  ;;  %p1237_p5 = scmp.lt.s32.totalorder %s1231_s24, %s1231_s24 }
   0xb   :  { %p1238_p6 = por %p1237_p5, %p1236_p4 }
   0xd   :  { %p1239_p7 = pnand %p1238_p6, %p1232_p3 }
   0xf   :  { %1242 = shalt.err (!%p1239_p7)
}
  0x10   :  { %s1270_s25 = smov 64   ;;  %s1271_s26 = smov 4  }
  0x11   :  { %27 = dma.hbm_to_vmem [thread:$0]  %s1431_s2, 3840, %s22_s16, [#allocation4], %s1270_s25, %s1270_s25, %s1271_s26  }
  0x12   :  { %s1272_s29 = smov [#allocation5]   ;;  %s1243_s7 = scalar_lea.hbm %s1432_s3, 384 }
  0x13   :  { %s33_s30 = sshll.u32 %s1272_s29, 4  ;;  %p1244_p8 = scmp.ne.s32.totalorder %s1432_s3, %s1243_s7  ;;  %s34_s30 = int_to_ptr.vmem [resolvable:$true] %s33_s30 }
  0x14   :  { %p1247_p9 = scmp.lt.u32.totalorder %s1243_s7, %s1432_s3 }
  0x16   :  { %p1249_p10 = pnand %p1247_p9, %p1244_p8 }
  0x18   :  { %1252 = shalt.err (!%p1249_p10)
}
  0x19   :  { %s1253_s12 = scalar_lea.vmem %s34_s30, 384  ;;  %p1258_p12 = scmp.lt.s32.totalorder %s34_s30, %s34_s30 }
  0x1a   :  { %p1254_p11 = scmp.ne.s32.totalorder %s34_s30, %s1253_s12  ;;  %p1259_p13 = scmp.lt.s32.totalorder %s1253_s12, %s1253_s12 }
  0x1c   :  { %p1260_p0 = por %p1259_p13, %p1258_p12 }
  0x1e   :  { %p1261_p1 = pnand %p1260_p0, %p1254_p11 }
  0x20   :  { %1264 = shalt.err (!%p1261_p1)
}
  0x21   :  { %s1273_s2 = smov 128   ;;  %s1274_s13 = smov 8  }
  0x22   :  { %39 = dma.hbm_to_vmem [thread:$0]  %s1432_s3, 384, %s34_s30, [#allocation6], %s1273_s2, %s1273_s2, %s1274_s13  }
  0x23   :  { %1265 = dma.done.wait [#allocation4], 3840  }
  0x24   :  { %1266 = vsyncadd [#allocation4], 4294963456 }
  0x25   :  { %1267 = dma.done.wait [#allocation6], 384  }
  0x26   :  { %1268 = vsyncadd [#allocation6], 4294966912  ;;  %v1275_v0 = vmov 0.0   ;;  %vm1276_vm0 = vmmov 0   ;;  %v1177_v1 = vld [vmem:[#allocation3] sm:$0xff]   ;;  %v1178_v2 = vld [vmem:[#allocation3 + $0x8] sm:$0xff]   ;;  %v67_v13 = vlaneseq  ;;  %v65_v16 = vstv %s1429_s0 }
  0x27   :  { %1073 = vmatprep.subr.bf16.mxu0 %v1275_v0  ;;  %1081 = vmatprep.mubr.msk.bf16.mxu0 %vm1276_vm0, %v1275_v0  ;;  %v1179_v3 = vld [vmem:[#allocation3 + $0x10] sm:$0xff]   ;;  %vm95_vm1 = vcmask 523264   ;;  %v1180_v4 = vld [vmem:[#allocation3 + $0x18] sm:$0xff]   ;;  %v977_v5 = vld [vmem:[%s1430_s1] ss:$0 sm:$0xff]  ;;  %vm263_vm2 = vcmask 261120  }
  0x28   :  { %1085 = vmatprep.subr.bf16.mxu1 %v1275_v0  ;;  %1093 = vmatprep.mubr.msk.bf16.mxu1 %vm1276_vm0, %v1275_v0  ;;  %v55_v6 = vpack.c.bf16 %v977_v5, %v977_v5  ;;  %v1181_v7 = vld [vmem:[#allocation3 + $0x20] sm:$0xff]   ;;  %v1182_v8 = vld [vmem:[#allocation3 + $0x28] sm:$0xff]   ;;  %v1183_v9 = vld [vmem:[#allocation3 + $0x30] sm:$0xff]   ;;  %v68_v14 = vshrl.u32 %v67_v13, 7  ;;  %vm926_vm4 = vcmask 785408  }
  0x29   :  { %1074 = vmatpush3.bf16.msra.mxu0 %v1177_v1  ;;  %1086 = vmatpush3.bf16.msra.mxu1 %v1181_v7  ;;  %v1184_v10 = vld [vmem:[#allocation3 + $0x38] sm:$0xff]   ;;  %v1185_v11 = vld [vmem:[#allocation3 + $0x40] sm:$0xff]   ;;  %v1186_v12 = vld [vmem:[#allocation3 + $0x48] sm:$0xff]  }
  0x2a   :  { %1075 = vmatprep.subr.bf16.mxu0 %v1275_v0  ;;  %1087 = vmatprep.subr.bf16.mxu1 %v1275_v0  ;;  %v64_v15 = vld [vmem:[#allocation5] sm:$0x1]  ;;  %v69_v18 = vsub.s32 0, %v68_v14  ;;  %v983_v21 = vld [vmem:[#allocation5 + $0x1] ss:$0 sm:$0xff]  ;;  %v1188_v54 = vld [vmem:[#allocation3 + $0x58] sm:$0xff]  }
  0x2b   :  { %v66_v17 = vmul.f32 %v65_v16, %v64_v15  ;;  %v993_v35 = vld [vmem:[#allocation5 + $0x3] ss:$0 sm:$0xff]  ;;  %v994_v45 = vld [vmem:[#allocation5 + $0x4] ss:$0 sm:$0xff]  ;;  %v995_v52 = vld [vmem:[#allocation5 + $0x5] ss:$0 sm:$0xff] }
  0x2c   :  { %v1187_v53 = vld [vmem:[#allocation3 + $0x50] sm:$0xff]   ;;  %v1189_v58 = vld [vmem:[#allocation3 + $0x60] sm:$0xff]   ;;  %v1190_v59 = vld [vmem:[#allocation3 + $0x68] sm:$0xff]  }
  0x2d   :  { %1076 = vmatpush3.bf16.msra.mxu0 %v1178_v2  ;;  %1088 = vmatpush3.bf16.msra.mxu1 %v1182_v8  ;;  %v70_v19 = vrot.slane %v66_v17, %v69_v18  ;;  %v1191_v5 = vld [vmem:[#allocation3 + $0x70] sm:$0xff]  }
  0x2e   :  { %1077 = vmatprep.subr.bf16.mxu0 %v1275_v0  ;;  %1089 = vmatprep.subr.bf16.mxu1 %v1275_v0  ;;  %v999_v7 = vld [vmem:[#allocation5 + $0x6] ss:$0 sm:$0xff]  ;;  %v1005_v15 = vld [vmem:[#allocation5 + $0x7] ss:$0 sm:$0xff] }
  0x31   :  { %1078 = vmatpush3.bf16.msra.mxu0 %v1179_v3  ;;  %1090 = vmatpush3.bf16.msra.mxu1 %v1183_v9 }
  0x32   :  { %1079 = vmatprep.subr.bf16.mxu0 %v1275_v0  ;;  %1091 = vmatprep.subr.bf16.mxu1 %v1275_v0 }
  0x35   :  { %1080 = vmatpush3.bf16.msra.mxu0 %v1180_v4  ;;  %1092 = vmatpush3.bf16.msra.mxu1 %v1184_v10 }
  0x36   :  { %1097 = vmatprep.subr.bf16.mxu0 %v1275_v0  ;;  %1105 = vmatprep.subr.bf16.mxu1 %v1275_v0 }
  0x38   :  { %1082 = vmatmul.mubr.msk.bf16.vlgmr.msra.gmra.mrb[0].mxu0 %vm95_vm1, %v55_v6  ;;  %v1192_v6 = vld [vmem:[#allocation3 + $0x78] sm:$0xff]  }
  0x39   :  { %1101 = vmatprep.mubr.msk.bf16.mxu0 %vm1276_vm0, %v1275_v0  ;;  %1098 = vmatpush3.bf16.msra.mxu0 %v1185_v11 }
  0x3a   :  { %1099 = vmatprep.subr.bf16.mxu0 %v1275_v0 }
  0x3d   :  { %1100 = vmatpush3.bf16.msra.mxu0 %v1186_v12 }
  0x3e   :  { %1113 = vmatprep.subr.bf16.mxu0 %v1275_v0 }
 0x10b   :  { %v133_v20 = vpop.f32.mrb[0].mxu0 }
 0x10c   :  { %v134_v22 = vadd.f32 %v133_v20, %v70_v19  ;;  %v1083_v23 = vpop.f32.mrb[1].mxu0 }
 0x10d   :  { %v136_v24 = vpop.f32.mrb[2].mxu0 }
 0x10e   :  { %v144_v25 = vadd.f32 %v983_v21, %v134_v22  ;;  %v1084_v26 = vpop.f32.mrb[3].mxu0 }
 0x110   :  { %1207 = vtanh.f32 %v144_v25  ;;  %v243_v27 = vpack.c.bf16 %v144_v25, %v144_v25 }
 0x112   :  { %249 = vrot.lane.b32.xlu0 %v243_v27, %s1270_s25 }
 0x11a   :  { %v1208_v28 = vpop.eup %1207 }
 0x11b   :  { %v146_v29 = vpack.c.bf16 %v1208_v28, %v1208_v28 }
 0x11d   :  { %1094 = vmatmul.mubr.msk.bf16.vlgmr.msra.gmra.mrb[0].mxu1 %vm95_vm1, %v146_v29 }
 0x11e   :  { %1109 = vmatprep.mubr.msk.bf16.mxu1 %vm1276_vm0, %v1275_v0  ;;  %1106 = vmatpush3.bf16.msra.mxu1 %v1187_v53 }
 0x11f   :  { %1107 = vmatprep.subr.bf16.mxu1 %v1275_v0 }
 0x122   :  { %1108 = vmatpush3.bf16.msra.mxu1 %v1188_v54 }
 0x123   :  { %1125 = vmatprep.subr.bf16.mxu1 %v1275_v0 }
 0x184   :  { %v250_v30 = vpop.permute.xlu0 %249 }
 0x185   :  { %1102 = vmatmul.mubr.msk.bf16.vlgmr.msra.gmra.mrb[4].mxu0 %vm263_vm2, %v250_v30 }
 0x186   :  { %1121 = vmatprep.mubr.msk.bf16.mxu0 %vm1276_vm0, %v1275_v0  ;;  %1114 = vmatpush3.bf16.msra.mxu0 %v1189_v58 }
 0x187   :  { %1115 = vmatprep.subr.bf16.mxu0 %v1275_v0 }
 0x18a   :  { %1116 = vmatpush3.bf16.msra.mxu0 %v1190_v59 }
 0x18b   :  { %1117 = vmatprep.subr.bf16.mxu0 %v1275_v0 }
 0x18e   :  { %1118 = vmatpush3.bf16.msra.mxu0 %v1191_v5 }
 0x18f   :  { %1119 = vmatprep.subr.bf16.mxu0 %v1275_v0 }
 0x192   :  { %1120 = vmatpush3.bf16.msra.mxu0 %v1192_v6 }
 0x193   :  { %1141 = vmatprep.subr.bf16.mxu0 %v1275_v0 }
 0x1f0   :  { %v1360_v31 = vpop.f32.mrb[0].mxu1 }
 0x1f1   :  { %v1095_v32 = vpop.f32.mrb[1].mxu1 }
 0x1f2   :  { %v219_v33 = vpop.f32.mrb[2].mxu1 }
 0x1f3   :  { %v1096_v34 = vpop.f32.mrb[3].mxu1  ;;  %v1007_v33 = vld [vmem:[#allocation5 + $0x9] ss:$0 sm:$0xff] }
 0x1f4   :  { %v1193_v34 = vld [vmem:[#allocation3 + $0x80] sm:$0xff]  }
 0x258   :  { %v301_v36 = vpop.f32.mrb[4].mxu0 }
 0x259   :  { %v312_v37 = vadd.f32 %v993_v35, %v301_v36  ;;  %v1103_v38 = vpop.f32.mrb[5].mxu0  ;;  %v1194_v35 = vld [vmem:[#allocation3 + $0x88] sm:$0xff]  }
 0x25a   :  { %v304_v39 = vpop.f32.mrb[6].mxu0 }
 0x25b   :  { %314 = vrot.lane.b32.xlu0 %v312_v37, %s1270_s25  ;;  %v1104_v40 = vpop.f32.mrb[7].mxu0 }
 0x2cd   :  { %v315_v41 = vpop.permute.xlu0 %314 }
 0x2ce   :  { %v317_v42 = vadd.f32 %v315_v41, %v144_v25  ;;  %v1006_v25 = vld [vmem:[#allocation5 + $0x8] ss:$0 sm:$0xff] }
 0x2d0   :  { %321 = vrot.lane.b32.xlu1 %v317_v42, %s1270_s25 }
 0x342   :  { %v322_v43 = vpop.permute.xlu1 %321 }
 0x343   :  { %v324_v44 = vsel %vm263_vm2, %v322_v43, 0.0 }
 0x344   :  { %325 = vadd.xlane.f32.xlu1 %v324_v44 }
 0x355   :  { %347 = vrot.lane.b32.xlu1 %v994_v45, %s1270_s25 }
 0x3d1   :  { %v326_v46 = vpop.xlane.xlu1 %325 }
 0x3d2   :  { %v328_v47 = vmul.f32 0.03125, %v326_v46 }
 0x3d4   :  { %v329_v48 = vsub.f32 %v317_v42, %v328_v47  ;;  %v1011_v47 = vld [vmem:[#allocation5 + $0xa] ss:$0 sm:$0xff] }
 0x3d5   :  { %v348_v61 = vpop.permute.xlu1 %347 }
 0x3d6   :  { %v330_v49 = vmul.f32 %v329_v48, %v329_v48 }
 0x3d8   :  { %332 = vrot.lane.b32.xlu0 %v330_v49, %s1270_s25 }
 0x44a   :  { %v333_v50 = vpop.permute.xlu0 %332 }
 0x44b   :  { %v335_v51 = vsel %vm263_vm2, %v333_v50, 0.0 }
 0x44c   :  { %336 = vadd.xlane.f32.xlu0 %v335_v51 }
 0x462   :  { %356 = vrot.lane.b32.xlu0 %v995_v52, %s1270_s25 }
 0x4d9   :  { %v337_v55 = vpop.xlane.xlu0 %336 }
 0x4da   :  { %v338_v56 = vmul.f32 0.03125, %v337_v55 }
 0x4dc   :  { %v339_v57 = vadd.f32 1e-05, %v338_v56 }
 0x4dd   :  { %v357_v63 = vpop.permute.xlu0 %356 }
 0x4de   :  { %1209 = vrsqrt.f32 %v339_v57  ;;  %v1012_v57 = vld [vmem:[#allocation5 + $0xb] ss:$0 sm:$0xff] }
 0x4e8   :  { %v1210_v60 = vpop.eup %1209 }
 0x4e9   :  { %v341_v62 = vmul.f32 %v1210_v60, %v329_v48 }
 0x4eb   :  { %v350_v1 = vmul.f32 %v348_v61, %v341_v62 }
 0x4ed   :  { %v359_v2 = vadd.f32 %v357_v63, %v350_v1  ;;  %v1013_v1 = vld [vmem:[#allocation5 + $0xc] ss:$0 sm:$0xff] }
 0x4ef   :  { %v360_v3 = vpack.c.bf16 %v359_v2, %v359_v2 }
 0x4f1   :  { %366 = vrot.lane.b32.xlu1 %v360_v3, %s1270_s25  ;;  %v1196_v3 = vld [vmem:[#allocation3 + $0x98] sm:$0xff]  }
 0x563   :  { %v367_v4 = vpop.permute.xlu1 %366 }
 0x564   :  { %1110 = vmatmul.mubr.msk.bf16.vlgmr.msra.gmra.mrb[4].mxu1 %vm263_vm2, %v367_v4 }
 0x565   :  { %1129 = vmatprep.mubr.msk.bf16.mxu1 %vm1276_vm0, %v1275_v0  ;;  %1126 = vmatpush3.bf16.msra.mxu1 %v1193_v34 }
 0x566   :  { %1127 = vmatprep.subr.bf16.mxu1 %v1275_v0 }
 0x569   :  { %1128 = vmatpush3.bf16.msra.mxu1 %v1194_v35 }
 0x56a   :  { %1133 = vmatprep.subr.bf16.mxu1 %v1275_v0 }
 0x637   :  { %v417_v8 = vpop.f32.mrb[4].mxu1 }
 0x638   :  { %v428_v9 = vadd.f32 %v999_v7, %v417_v8  ;;  %v1111_v10 = vpop.f32.mrb[5].mxu1  ;;  %v1197_v7 = vld [vmem:[#allocation3 + $0xa0] sm:$0xff]   ;;  %v1198_v8 = vld [vmem:[#allocation3 + $0xa8] sm:$0xff]  }
 0x639   :  { %v420_v11 = vpop.f32.mrb[6].mxu1 }
 0x63a   :  { %v429_v12 = vmax.f32 %v428_v9, 0.0  ;;  %v1112_v13 = vpop.f32.mrb[7].mxu1 }
 0x63c   :  { %v430_v14 = vpack.c.bf16 %v429_v12, %v429_v12 }
 0x63e   :  { %1122 = vmatmul.mubr.msk.bf16.vlgmr.msra.gmra.mrb[8].mxu0 %vm95_vm1, %v430_v14 }
 0x63f   :  { %1149 = vmatprep.mubr.msk.bf16.mxu0 %vm1276_vm0, %v1275_v0  ;;  %1142 = vmatpush3.bf16.msra.mxu0 %v1197_v7 }
 0x640   :  { %1143 = vmatprep.subr.bf16.mxu0 %v1275_v0 }
 0x643   :  { %1144 = vmatpush3.bf16.msra.mxu0 %v1198_v8 }
 0x644   :  { %1145 = vmatprep.subr.bf16.mxu0 %v1275_v0 }
 0x711   :  { %v500_v16 = vpop.f32.mrb[8].mxu0 }
 0x712   :  { %v511_v17 = vadd.f32 %v1005_v15, %v500_v16  ;;  %v1123_v18 = vpop.f32.mrb[9].mxu0 }
 0x713   :  { %v503_v19 = vpop.f32.mrb[10].mxu0  ;;  %v1200_v18 = vld [vmem:[#allocation3 + $0xb8] sm:$0xff]  }
 0x714   :  { %513 = vrot.lane.b32.xlu1 %v511_v17, %s1270_s25  ;;  %v1124_v20 = vpop.f32.mrb[11].mxu0  ;;  %v1199_v17 = vld [vmem:[#allocation3 + $0xb0] sm:$0xff]   ;;  %v1017_v19 = vld [vmem:[#allocation5 + $0xd] ss:$0 sm:$0xff] }
 0x715   :  { %1146 = vmatpush3.bf16.msra.mxu0 %v1199_v17 }
 0x716   :  { %1147 = vmatprep.subr.bf16.mxu0 %v1275_v0 }
 0x719   :  { %1148 = vmatpush3.bf16.msra.mxu0 %v1200_v18 }
 0x786   :  { %v514_v21 = vpop.permute.xlu1 %513 }
 0x787   :  { %v516_v22 = vadd.f32 %v514_v21, %v359_v2  ;;  %v1195_v2 = vld [vmem:[#allocation3 + $0x90] sm:$0xff]  }
 0x789   :  { %520 = vrot.lane.b32.xlu0 %v516_v22, %s1270_s25 }
 0x7fb   :  { %v521_v23 = vpop.permute.xlu0 %520 }
 0x7fc   :  { %v523_v24 = vsel %vm263_vm2, %v521_v23, 0.0 }
 0x7fd   :  { %524 = vadd.xlane.f32.xlu1 %v523_v24 }
 0x80e   :  { %545 = vrot.lane.b32.xlu1 %v1006_v25, %s1270_s25 }
 0x88a   :  { %v525_v26 = vpop.xlane.xlu1 %524 }
 0x88b   :  { %v526_v27 = vmul.f32 0.03125, %v525_v26 }
 0x88d   :  { %v527_v28 = vsub.f32 %v516_v22, %v526_v27  ;;  %v1023_v27 = vld [vmem:[#allocation5 + $0xe] ss:$0 sm:$0xff] }
 0x88e   :  { %v546_v40 = vpop.permute.xlu1 %545 }
 0x88f   :  { %v528_v29 = vmul.f32 %v527_v28, %v527_v28 }
 0x891   :  { %530 = vrot.lane.b32.xlu0 %v528_v29, %s1270_s25 }
 0x903   :  { %v531_v30 = vpop.permute.xlu0 %530 }
 0x904   :  { %v533_v32 = vsel %vm263_vm2, %v531_v30, 0.0 }
 0x905   :  { %534 = vadd.xlane.f32.xlu0 %v533_v32 }
 0x91b   :  { %554 = vrot.lane.b32.xlu0 %v1007_v33, %s1270_s25 }
 0x992   :  { %v535_v36 = vpop.xlane.xlu0 %534 }
 0x993   :  { %v536_v37 = vmul.f32 0.03125, %v535_v36 }
 0x995   :  { %v537_v38 = vadd.f32 1e-05, %v536_v37 }
 0x996   :  { %v555_v42 = vpop.permute.xlu0 %554 }
 0x997   :  { %1211 = vrsqrt.f32 %v537_v38  ;;  %v1024_v38 = vld [vmem:[#allocation5 + $0xf] ss:$0 sm:$0xff] }
 0x9a1   :  { %v1212_v39 = vpop.eup %1211 }
 0x9a2   :  { %v539_v41 = vmul.f32 %v1212_v39, %v527_v28 }
 0x9a4   :  { %v548_v43 = vmul.f32 %v546_v40, %v539_v41 }
 0x9a6   :  { %v557_v44 = vadd.f32 %v555_v42, %v548_v43 }
 0x9a8   :  { %v558_v45 = vpack.c.bf16 %v557_v44, %v557_v44 }
 0x9aa   :  { %564 = vrot.lane.b32.xlu1 %v558_v45, %s1270_s25  ;;  %v1201_v45 = vld [vmem:[#allocation3 + $0xc0] sm:$0xff]  }
 0xa1c   :  { %v565_v46 = vpop.permute.xlu1 %564 }
 0xa1d   :  { %1130 = vmatmul.mubr.msk.bf16.vlgmr.msra.gmra.mrb[8].mxu1 %vm263_vm2, %v565_v46  ;;  %v1202_v46 = vld [vmem:[#allocation3 + $0xc8] sm:$0xff]  }
 0xa1e   :  { %1137 = vmatprep.mubr.msk.bf16.mxu1 %vm1276_vm0, %v1275_v0  ;;  %1134 = vmatpush3.bf16.msra.mxu1 %v1195_v2 }
 0xa1f   :  { %1135 = vmatprep.subr.bf16.mxu1 %v1275_v0 }
 0xa22   :  { %1136 = vmatpush3.bf16.msra.mxu1 %v1196_v3 }
 0xa23   :  { %1153 = vmatprep.subr.bf16.mxu1 %v1275_v0 }
 0xaf0   :  { %v615_v48 = vpop.f32.mrb[8].mxu1 }
 0xaf1   :  { %v626_v49 = vadd.f32 %v1011_v47, %v615_v48  ;;  %v1131_v50 = vpop.f32.mrb[9].mxu1  ;;  %v1025_v47 = vld [vmem:[#allocation5 + $0x10] ss:$0 sm:$0xff]  ;;  %v1203_v48 = vld [vmem:[#allocation3 + $0xd0] sm:$0xff]  }
 0xaf2   :  { %v618_v51 = vpop.f32.mrb[10].mxu1  ;;  %v1205_v50 = vld [vmem:[#allocation3 + $0xe0] sm:$0xff]  }
 0xaf3   :  { %628 = vrot.lane.b32.xlu1 %v626_v49, %s1270_s25  ;;  %v1132_v52 = vpop.f32.mrb[11].mxu1  ;;  %v1204_v49 = vld [vmem:[#allocation3 + $0xd8] sm:$0xff]   ;;  %v1206_v51 = vld [vmem:[#allocation3 + $0xe8] sm:$0xff]  }
 0xaf4   :  { %v989_v52 = vld [vmem:[#allocation5 + $0x2] ss:$0 sm:$0xff] }
 0xb65   :  { %v629_v53 = vpop.permute.xlu1 %628 }
 0xb66   :  { %v631_v54 = vadd.f32 %v629_v53, %v557_v44  ;;  %v227_v53 = vadd.f32 %v989_v52, %v1360_v31 }
 0xb68   :  { %635 = vrot.lane.b32.xlu0 %v631_v54, %s1270_s25  ;;  %v228_v8 = vmax.f32 %v227_v53, 0.0 }
 0xbda   :  { %v636_v55 = vpop.permute.xlu0 %635 }
 0xbdb   :  { %v638_v56 = vsel %vm263_vm2, %v636_v55, 0.0 }
 0xbdc   :  { %639 = vadd.xlane.f32.xlu1 %v638_v56 }
 0xbed   :  { %660 = vrot.lane.b32.xlu1 %v1012_v57, %s1270_s25 }
 0xc69   :  { %v640_v58 = vpop.xlane.xlu1 %639 }
 0xc6a   :  { %v641_v59 = vmul.f32 0.03125, %v640_v58 }
 0xc6c   :  { %v642_v60 = vsub.f32 %v631_v54, %v641_v59  ;;  %v229_v54 = vand.u32 2147483647, %v227_v53 }
 0xc6d   :  { %v661_v10 = vpop.permute.xlu1 %660 }
 0xc6e   :  { %v643_v61 = vmul.f32 %v642_v60, %v642_v60  ;;  %v230_v55 = vsub.f32 0.0, %v229_v54 }
 0xc70   :  { %645 = vrot.lane.b32.xlu0 %v643_v61, %s1270_s25  ;;  %v231_v56 = vmul.f32 1.442695, %v230_v55 }
 0xce2   :  { %v646_v62 = vpop.permute.xlu0 %645 }
 0xce3   :  { %v648_v63 = vsel %vm263_vm2, %v646_v62, 0.0 }
 0xce4   :  { %649 = vadd.xlane.f32.xlu0 %v648_v63 }
 0xcfa   :  { %669 = vrot.lane.b32.xlu0 %v1013_v1, %s1270_s25 }
 0xd71   :  { %v650_v4 = vpop.xlane.xlu0 %649 }
 0xd72   :  { %v651_v5 = vmul.f32 0.03125, %v650_v4 }
 0xd74   :  { %v652_v6 = vadd.f32 1e-05, %v651_v5 }
 0xd75   :  { %v670_v12 = vpop.permute.xlu0 %669 }
 0xd76   :  { %1213 = vrsqrt.f32 %v652_v6 }
 0xd77   :  { %1215 = vpow2.f32 %v231_v56 }
 0xd80   :  { %v1214_v9 = vpop.eup %1213 }
 0xd81   :  { %v654_v11 = vmul.f32 %v1214_v9, %v642_v60  ;;  %v1216_v57 = vpop.eup %1215 }
 0xd82   :  { %v233_v58 = vadd.f32 1.0, %v1216_v57  ;;  %v236_v62 = vmul.f32 -0.5, %v1216_v57 }
 0xd83   :  { %v663_v13 = vmul.f32 %v661_v10, %v654_v11 }
 0xd84   :  { %1217 = vlog2.f32 %v233_v58  ;;  %v237_v1 = vadd.f32 1.0, %v236_v62 }
 0xd85   :  { %v672_v14 = vadd.f32 %v670_v12, %v663_v13 }
 0xd86   :  { %v238_v4 = vmul.f32 %v1216_v57, %v237_v1 }
 0xd87   :  { %v673_v15 = vpack.c.bf16 %v672_v14, %v672_v14 }
 0xd89   :  { %679 = vrot.lane.b32.xlu1 %v673_v15, %s1270_s25 }
 0xd8e   :  { %v1218_v63 = vpop.eup %1217 }
 0xd8f   :  { %v235_v2 = vmul.f32 0.6931472, %v1218_v63 }
 0xdfb   :  { %v680_v16 = vpop.permute.xlu1 %679 }
 0xdfc   :  { %1138 = vmatmul.mubr.msk.bf16.vlgmr.msra.gmra.mrb[12].mxu1 %vm263_vm2, %v680_v16 }
 0xdfd   :  { %1165 = vmatprep.mubr.msk.bf16.mxu1 %vm1276_vm0, %v1275_v0  ;;  %1154 = vmatpush3.bf16.msra.mxu1 %v1201_v45 }
 0xdfe   :  { %1155 = vmatprep.subr.bf16.mxu1 %v1275_v0 }
 0xe01   :  { %1156 = vmatpush3.bf16.msra.mxu1 %v1202_v46 }
 0xe02   :  { %1157 = vmatprep.subr.bf16.mxu1 %v1275_v0 }
 0xe05   :  { %1158 = vmatpush3.bf16.msra.mxu1 %v1203_v48 }
 0xe06   :  { %1159 = vmatprep.subr.bf16.mxu1 %v1275_v0 }
 0xe09   :  { %1160 = vmatpush3.bf16.msra.mxu1 %v1204_v49 }
 0xe0a   :  { %1161 = vmatprep.subr.bf16.mxu1 %v1275_v0 }
 0xe0d   :  { %1162 = vmatpush3.bf16.msra.mxu1 %v1205_v50 }
 0xe0e   :  { %1163 = vmatprep.subr.bf16.mxu1 %v1275_v0  ;;  %v239_v0 = vand.u32 2147483647, %v1216_v57 }
 0xe10   :  { %vm240_vm3 = vcmp.lt.f32.partialorder %v239_v0, 0.0004427343 }
 0xe11   :  { %1164 = vmatpush3.bf16.msra.mxu1 %v1206_v51  ;;  %v241_v6 = vsel %vm240_vm3, %v238_v4, %v235_v2 }
 0xe12   :  { %v242_v10 = vadd.f32 %v241_v6, %v228_v8 }
 0xecf   :  { %v730_v20 = vpop.f32.mrb[12].mxu1 }
 0xed0   :  { %v741_v21 = vadd.f32 %v1017_v19, %v730_v20  ;;  %v1139_v22 = vpop.f32.mrb[13].mxu1 }
 0xed1   :  { %v733_v23 = vpop.f32.mrb[14].mxu1 }
 0xed2   :  { %v742_v24 = vmax.f32 %v741_v21, 0.0  ;;  %v1140_v25 = vpop.f32.mrb[15].mxu1 }
 0xed4   :  { %v743_v26 = vpack.c.bf16 %v742_v24, %v742_v24 }
 0xed6   :  { %1150 = vmatmul.mubr.msk.bf16.vlgmr.msra.gmra.mrb[12].mxu0 %vm95_vm1, %v743_v26 }
 0xfa9   :  { %v813_v28 = vpop.f32.mrb[12].mxu0 }
 0xfaa   :  { %v824_v29 = vadd.f32 %v1023_v27, %v813_v28  ;;  %v1151_v30 = vpop.f32.mrb[13].mxu0 }
 0xfab   :  { %v816_v32 = vpop.f32.mrb[14].mxu0 }
 0xfac   :  { %826 = vrot.lane.b32.xlu1 %v824_v29, %s1270_s25  ;;  %v1152_v33 = vpop.f32.mrb[15].mxu0 }
0x101e   :  { %v827_v34 = vpop.permute.xlu1 %826 }
0x101f   :  { %v829_v35 = vadd.f32 %v827_v34, %v672_v14  ;;  %v1026_v14 = vld [vmem:[#allocation5 + $0x11] ss:$0 sm:$0xff] }
0x1021   :  { %833 = vrot.lane.b32.xlu0 %v829_v35, %s1270_s25 }
0x1093   :  { %v834_v36 = vpop.permute.xlu0 %833 }
0x1094   :  { %v836_v37 = vsel %vm263_vm2, %v834_v36, 0.0 }
0x1095   :  { %837 = vadd.xlane.f32.xlu1 %v836_v37 }
0x10a6   :  { %858 = vrot.lane.b32.xlu1 %v1024_v38, %s1270_s25 }
0x1122   :  { %v838_v39 = vpop.xlane.xlu1 %837 }
0x1123   :  { %v839_v40 = vmul.f32 0.03125, %v838_v39 }
0x1125   :  { %v840_v41 = vsub.f32 %v829_v35, %v839_v40 }
0x1126   :  { %v859_v5 = vpop.permute.xlu1 %858 }
0x1127   :  { %v841_v42 = vmul.f32 %v840_v41, %v840_v41 }
0x1129   :  { %843 = vrot.lane.b32.xlu0 %v841_v42, %s1270_s25 }
0x119b   :  { %v844_v43 = vpop.permute.xlu0 %843 }
0x119c   :  { %v846_v44 = vsel %vm263_vm2, %v844_v43, 0.0 }
0x119d   :  { %847 = vadd.xlane.f32.xlu0 %v846_v44 }
0x11b3   :  { %867 = vrot.lane.b32.xlu0 %v1025_v47, %s1270_s25 }
0x122a   :  { %v848_v59 = vpop.xlane.xlu0 %847 }
0x122b   :  { %v849_v60 = vmul.f32 0.03125, %v848_v59 }
0x122d   :  { %v850_v61 = vadd.f32 1e-05, %v849_v60 }
0x122e   :  { %v868_v7 = vpop.permute.xlu0 %867 }
0x122f   :  { %1219 = vrsqrt.f32 %v850_v61 }
0x1239   :  { %v1220_v3 = vpop.eup %1219 }
0x123a   :  { %v852_v31 = vmul.f32 %v1220_v3, %v840_v41 }
0x123c   :  { %v861_v9 = vmul.f32 %v859_v5, %v852_v31 }
0x123e   :  { %v870_v11 = vadd.f32 %v868_v7, %v861_v9 }
0x1240   :  { %v871_v12 = vsel %vm95_vm1, %v242_v10, %v870_v11 }
0x1241   :  { %v872_v13 = vpack.c.bf16 %v871_v12, %v871_v12 }
0x1243   :  { %1166 = vmatmul.mubr.msk.bf16.vlgmr.msra.gmra.mrb[16].mxu1 %vm926_vm4, %v872_v13 }
0x1316   :  { %v964_v15 = vpop.f32.mrb[16].mxu1 }
0x1317   :  { %v965_v16 = vadd.f32 %v1026_v14, %v964_v15  ;;  %v1167_v17 = vpop.f32.mrb[17].mxu1 }
0x1318   :  { %v967_v18 = vpop.f32.mrb[18].mxu1 }
0x1319   :  { %970 = vst [vmem:[%s1433_s4] sm:$0xff] %v965_v16  ;;  %v1168_v19 = vpop.f32.mrb[19].mxu1 }
0x131a   :  { %975 = vsyncpa [#allocation4], 1 }
0x131b   :  { %976 = vsyncpa [#allocation6], 1 }

</bundles_post_ra>
